<compile_context>
chip_gen: v7x
topology: tpu7x:2x2x1
jax: 0.10.0
libtpu: 0.0.40
codegen_flags: <defaults>
</compile_context>

<pallas_src>
import functools
import math

import jax
import jax.numpy as jnp
from jax import lax
from jax.experimental import pallas as pl
from jax.experimental.pallas import tpu as pltpu


def _mha_kernel(x_ref, wqkv_ref, bqkv_ref, wo_ref, bo_ref, out_ref, att_ref,
                *maybe_acc, scale, compute_dtype):
    qi = pl.program_id(1)
    h = pl.program_id(2)

    # f32 output -> accumulate directly into the VMEM-resident out block;
    # otherwise an f32 scratch accumulator is provided.
    acc_ref = maybe_acc[0] if maybe_acc else out_ref

    S = x_ref.shape[1]
    block_q = out_ref.shape[1]
    d_key = wo_ref.shape[1]
    approx_recip = jnp.dtype(compute_dtype) != jnp.dtype(jnp.float32)

    @pl.when(h == 0)
    def _init():
        acc_ref[...] = jnp.zeros_like(acc_ref)

    wqkv = wqkv_ref[0].astype(compute_dtype)        # (d_model, 3*d_key)
    bqkv = bqkv_ref[0]                              # (1, 3*d_key), f32

    x_view = x_ref.at[0]                            # (S, d_model) ref view
    if block_q == S:
        # Single q-tile: one fused QKV matmul (3*d_key output width on the MXU).
        x = x_view[...].astype(compute_dtype)
        qkv = jnp.dot(x, wqkv, preferred_element_type=jnp.float32) + bqkv
        q = qkv[:, :d_key]
        k = qkv[:, d_key:2 * d_key]
        v = qkv[:, 2 * d_key:]
    else:
        # Q-tiled path (large S): Q from this tile's rows, fused K|V from all rows.
        # TODO(synk): cache per-head K/V across q-tiles (would require the q axis to be
        # "arbitrary"); recomputed per q-tile here to stay megacore-safe.
        q_start = pl.multiple_of(qi * block_q, block_q)
        x_q = x_view[pl.ds(q_start, block_q), :].astype(compute_dtype)
        x_full = x_view[...].astype(compute_dtype)
        q = jnp.dot(x_q, wqkv[:, :d_key],
                    preferred_element_type=jnp.float32) + bqkv[:, :d_key]
        kv = jnp.dot(x_full, wqkv[:, d_key:],
                     preferred_element_type=jnp.float32) + bqkv[:, d_key:]
        k = kv[:, :d_key]
        v = kv[:, d_key:]

    # Scaled dot-product attention; contract last dims directly (no k.T -> no XLU pass).
    s = lax.dot_general(q.astype(compute_dtype), k.astype(compute_dtype),
                        dimension_numbers=(((1,), (1,)), ((), ())),
                        preferred_element_type=jnp.float32) * scale      # (block_q, S)
    s_max = jnp.max(s, axis=-1, keepdims=True)
    p = jnp.exp(s - s_max)
    denom = jnp.sum(p, axis=-1, keepdims=True)
    inv = pl.reciprocal(denom, approx=approx_recip)   # EUP slot instead of VPU divide
    att = p * inv
    att_ref[0, 0] = att.astype(att_ref.dtype)

    vals = jnp.dot(att.astype(compute_dtype), v.astype(compute_dtype),
                   preferred_element_type=jnp.float32)                   # (block_q, d_key)

    # Output projection: reduction over heads into the resident accumulator.
    contrib = jnp.dot(vals.astype(compute_dtype), wo_ref[0].astype(compute_dtype),
                      preferred_element_type=jnp.float32)                # (block_q, d_model)
    acc_ref[...] += contrib[None].astype(acc_ref.dtype)

    @pl.when(h == pl.num_programs(2) - 1)
    def _finalize():
        out_ref[...] = (acc_ref[...].astype(jnp.float32) + bo_ref[...]).astype(out_ref.dtype)


def prepare_mha_params(wq, bq, wk, bk, wv, bv, wo, bo, *, num_heads):
    """One-time weight re-layout (do this at model init, NOT per call).

    Weights use the `x @ W + b` convention (W: (d_model, d_hidden), Wo: (d_hidden, d_model)).
    """
    d_model, d_hidden = wq.shape
    assert d_hidden % num_heads == 0, "d_hidden must be divisible by num_heads"
    d_key = d_hidden // num_heads

    def split_heads(w):  # (d_model, d_hidden) -> (d_model, H, d_key), head-major like torch .view
        return w.reshape(d_model, num_heads, d_key)

    wqkv = jnp.concatenate([split_heads(wq), split_heads(wk), split_heads(wv)],
                           axis=-1).transpose(1, 0, 2)                   # (H, d_model, 3*d_key)
    bqkv = jnp.concatenate([bq.reshape(num_heads, 1, d_key),
                            bk.reshape(num_heads, 1, d_key),
                            bv.reshape(num_heads, 1, d_key)],
                           axis=-1).astype(jnp.float32)                  # (H, 1, 3*d_key)
    wo_h = wo.reshape(num_heads, d_key, d_model)                         # (H, d_key, d_model)
    bo_2 = bo.reshape(1, d_model).astype(jnp.float32)                    # (1, d_model)
    return {"wqkv": wqkv, "bqkv": bqkv, "wo": wo_h, "bo": bo_2}


def multi_head_attention(x, params, *, block_q=None, compute_dtype=jnp.bfloat16,
                         att_dtype=None):
    """x: (B, S, d_model). Returns (output (B,S,d_model), attention (B,H,S,S))."""
    B, S, d_model = x.shape
    wqkv, bqkv, wo_h, bo_2 = params["wqkv"], params["bqkv"], params["wo"], params["bo"]
    num_heads, _, three_dk = wqkv.shape
    d_key = three_dk // 3
    scale = 1.0 / math.sqrt(d_key)

    if block_q is None or block_q >= S:
        block_q = S
    assert S % block_q == 0, "block_q must divide the sequence length"
    num_q = S // block_q

    out_dtype = x.dtype
    att_dtype = x.dtype if att_dtype is None else att_dtype

    # f32 outputs: accumulate in the out block itself (saves VMEM + a finalize copy).
    use_scratch = jnp.dtype(out_dtype) != jnp.dtype(jnp.float32)
    scratch_shapes = ([pltpu.VMEM((1, block_q, d_model), jnp.float32)]
                      if use_scratch else [])

    # Rough per-step VMEM footprint (double-buffered blocks + scratch). Raise the scoped
    # limit above the 32 MiB default only when large blocks need it (stay < v7x 64 MiB).
    itemsize = max(jnp.dtype(x.dtype).itemsize, jnp.dtype(wqkv.dtype).itemsize)
    blk_elems = (S * d_model + d_model * 3 * d_key + 3 * d_key + d_key * d_model
                 + d_model + block_q * d_model + block_q * S)
    est_bytes = 2 * blk_elems * itemsize + (4 * block_q * d_model if use_scratch else 0)
    vmem_limit = None
    if est_bytes > 24 * 2**20:
        vmem_limit = int(min(56 * 2**20, 2 * est_bytes))

    grid = (B, num_q, num_heads)  # head axis innermost ("arbitrary") -> output accumulation
    kernel = functools.partial(_mha_kernel, scale=scale, compute_dtype=compute_dtype)

    out, att = pl.pallas_call(
        kernel,
        grid=grid,
        in_specs=[
            pl.BlockSpec((1, S, d_model), lambda b, qi, h: (b, 0, 0)),          # x (DMA once/batch)
            pl.BlockSpec((1, d_model, 3 * d_key), lambda b, qi, h: (h, 0, 0)),  # fused Wqkv
            pl.BlockSpec((1, 1, 3 * d_key), lambda b, qi, h: (h, 0, 0)),        # fused bqkv
            pl.BlockSpec((1, d_key, d_model), lambda b, qi, h: (h, 0, 0)),      # Wo (per head)
            pl.BlockSpec((1, d_model), lambda b, qi, h: (0, 0)),                # bo (resident)
        ],
        out_specs=[
            pl.BlockSpec((1, block_q, d_model), lambda b, qi, h: (b, qi, 0)),   # output (acc over h)
            pl.BlockSpec((1, 1, block_q, S), lambda b, qi, h: (b, h, qi, 0)),   # attention probs
        ],
        out_shape=[
            jax.ShapeDtypeStruct((B, S, d_model), out_dtype),
            jax.ShapeDtypeStruct((B, num_heads, S, S), att_dtype),
        ],
        scratch_shapes=scratch_shapes,
        compiler_params=pltpu.CompilerParams(
            # Head axis must remain innermost + "arbitrary" (output accumulator).
            dimension_semantics=("parallel", "parallel", "arbitrary"),
            vmem_limit_bytes=vmem_limit),
    )(x, wqkv, bqkv, wo_h, bo_2)
    return out, att


def _reference(x, wq, bq, wk, bk, wv, bv, wo, bo, *, num_heads, matmul_dtype=jnp.float32):
    """Pure-JAX reference; matmul operands cast to matmul_dtype, f32 accumulation."""
    B, S, d_model = x.shape
    d_hidden = wq.shape[1]
    d_key = d_hidden // num_heads
    md = matmul_dtype

    def mm(a, b):
        return jnp.matmul(a.astype(md), b.astype(md), preferred_element_type=jnp.float32)

    q = (mm(x, wq) + bq).reshape(B, S, num_heads, d_key).transpose(0, 2, 1, 3)
    k = (mm(x, wk) + bk).reshape(B, S, num_heads, d_key).transpose(0, 2, 1, 3)
    v = (mm(x, wv) + bv).reshape(B, S, num_heads, d_key).transpose(0, 2, 1, 3)
    s = jnp.einsum("bhqd,bhkd->bhqk", q.astype(md), k.astype(md),
                   preferred_element_type=jnp.float32) / math.sqrt(d_key)
    att = jax.nn.softmax(s, axis=-1)
    vals = jnp.einsum("bhqk,bhkd->bhqd", att.astype(md), v.astype(md),
                      preferred_element_type=jnp.float32)
    vals = vals.transpose(0, 2, 1, 3).reshape(B, S, d_hidden)
    out = mm(vals, wo) + bo
    return out, att


if __name__ == "__main__":
    def run_case(seed, *, B, S, d_model, d_hidden, num_heads, x_dtype,
                 compute_dtype, block_q, atol, rtol):
        ks = jax.random.split(jax.random.PRNGKey(seed), 9)

        def init_w(k, shape, fan_in):
            return jax.random.normal(k, shape, jnp.float32) / math.sqrt(fan_in)

        x = jax.random.normal(ks[0], (B, S, d_model), jnp.float32).astype(x_dtype)
        wq = init_w(ks[1], (d_model, d_hidden), d_model)
        wk = init_w(ks[2], (d_model, d_hidden), d_model)
        wv = init_w(ks[3], (d_model, d_hidden), d_model)
        wo = init_w(ks[4], (d_hidden, d_model), d_hidden)
        bq = 0.02 * jax.random.normal(ks[5], (d_hidden,), jnp.float32)
        bk = 0.02 * jax.random.normal(ks[6], (d_hidden,), jnp.float32)
        bv = 0.02 * jax.random.normal(ks[7], (d_hidden,), jnp.float32)
        bo = 0.02 * jax.random.normal(ks[8], (d_model,), jnp.float32)

        params = prepare_mha_params(wq, bq, wk, bk, wv, bv, wo, bo, num_heads=num_heads)
        out, att = multi_head_attention(x, params, block_q=block_q,
                                        compute_dtype=compute_dtype)
        out, att = jax.block_until_ready((out, att))

        ref_out, ref_att = _reference(x.astype(jnp.float32), wq, bq, wk, bk, wv, bv, wo, bo,
                                      num_heads=num_heads, matmul_dtype=compute_dtype)

        assert out.shape == (B, S, d_model) and att.shape == (B, num_heads, S, S)
        assert out.dtype == x.dtype and att.dtype == x.dtype
        for name, got, want in (("output", out, ref_out), ("attention", att, ref_att)):
            got32 = got.astype(jnp.float32)
            want32 = want.astype(jnp.float32)
            err = float(jnp.max(jnp.abs(got32 - want32)))
            assert jnp.allclose(got32, want32, atol=atol, rtol=rtol), (
                f"{name} mismatch (max abs err {err:.4f})")

    # Case 1: f32 end-to-end, single q-tile -> fused QKV path, accumulate in out_ref.
    run_case(0, B=2, S=8, d_model=32, d_hidden=32, num_heads=4,
             x_dtype=jnp.float32, compute_dtype=jnp.float32, block_q=None,
             atol=2e-2, rtol=2e-2)

    # Case 2: bf16 activations + bf16 MXU operands, q-tiled (2 q-tiles), f32 scratch acc.
    run_case(1, B=1, S=16, d_model=32, d_hidden=32, num_heads=4,
             x_dtype=jnp.bfloat16, compute_dtype=jnp.bfloat16, block_q=8,
             atol=3e-2, rtol=3e-2)

    print("KERNEL_OK")
</pallas_src>

<mosaic_0001>
module attributes {stable_mosaic.version = 11 : i64} {
  func.func @_mha_kernel(%arg0: i32, %arg1: i32, %arg2: i32, %arg3: memref<1x8x32xf32, #tpu.memory_space<vmem>>, %arg4: memref<1x32x24xf32, #tpu.memory_space<vmem>>, %arg5: memref<1x1x24xf32, #tpu.memory_space<vmem>>, %arg6: memref<1x8x32xf32, #tpu.memory_space<vmem>>, %arg7: memref<1x32xf32, #tpu.memory_space<vmem>>, %arg8: memref<1x8x32xf32, #tpu.memory_space<vmem>>, %arg9: memref<1x1x8x8xf32, #tpu.memory_space<vmem>>) attributes {dimension_semantics = [#tpu.dimension_semantics<parallel>, #tpu.dimension_semantics<parallel>, #tpu.dimension_semantics<arbitrary>], iteration_bounds = array<i64: 2, 1, 4>, scalar_prefetch = 0 : i64, scratch_operands = 0 : i64, tpu.core_type = #tpu.core_type<tc>, window_params = [{transform_indices = @transform_0, window_bounds = array<i64: 1, 8, 32>}, {transform_indices = @transform_1, window_bounds = array<i64: 1, 32, 24>}, {transform_indices = @transform_2, window_bounds = array<i64: 1, 1, 24>}, {transform_indices = @transform_3, window_bounds = array<i64: 1, 8, 32>}, {pipeline_mode = #tpu.pipeline_mode<synchronous>, transform_indices = @transform_4, window_bounds = array<i64: 1, 32>}, {transform_indices = @transform_5, window_bounds = array<i64: 1, 8, 32>}, {transform_indices = @transform_6, window_bounds = array<i64: 1, 1, 8, 8>}]} {
    %c0_i32 = arith.constant 0 : i32
    %0 = arith.cmpi eq, %arg2, %c0_i32 : i32
    %1 = arith.extui %0 : i1 to i32
    %c0_i32_0 = arith.constant 0 : i32
    %2 = arith.cmpi ne, %1, %c0_i32_0 : i32
    scf.if %2 {
      %cst_29 = arith.constant 0.000000e+00 : f32
      %42 = vector.broadcast %cst_29 : f32 to vector<1x8x32xf32>
      %c0_30 = arith.constant 0 : index
      %c0_31 = arith.constant 0 : index
      %c0_32 = arith.constant 0 : index
      %43 = vector.load %arg8[%c0_30, %c0_31, %c0_32] : memref<1x8x32xf32, #tpu.memory_space<vmem>>, vector<1x8x32xf32>
      tpu.vector_store %arg8[%c0_30, %c0_31, %c0_32], %42 {strides = array<i32>} : memref<1x8x32xf32, #tpu.memory_space<vmem>>, vector<1x8x32xf32>,
    } else {
    }
    %c0 = arith.constant 0 : index
    %c0_1 = arith.constant 0 : index
    %c0_2 = arith.constant 0 : index
    %3 = vector.load %arg4[%c0, %c0_1, %c0_2] : memref<1x32x24xf32, #tpu.memory_space<vmem>>, vector<1x32x24xf32>
    %4 = vector.shape_cast %3 : vector<1x32x24xf32> to vector<32x24xf32>
    %c0_3 = arith.constant 0 : index
    %c0_4 = arith.constant 0 : index
    %c0_5 = arith.constant 0 : index
    %5 = vector.load %arg5[%c0_3, %c0_4, %c0_5] : memref<1x1x24xf32, #tpu.memory_space<vmem>>, vector<1x1x24xf32>
    %6 = vector.shape_cast %5 : vector<1x1x24xf32> to vector<1x24xf32>
    %c0_6 = arith.constant 0 : index
    %c0_7 = arith.constant 0 : index
    %c0_8 = arith.constant 0 : index
    %7 = vector.load %arg3[%c0_6, %c0_7, %c0_8] : memref<1x8x32xf32, #tpu.memory_space<vmem>>, vector<1x8x32xf32>
    %8 = vector.shape_cast %7 : vector<1x8x32xf32> to vector<8x32xf32>
    %cst = arith.constant dense<0.000000e+00> : vector<8x24xf32>
    %9 = tpu.matmul %8, %4, %cst {dimension_numbers = #tpu.dot_dimension_numbers<[1], [0], [0], [1], [0, 0, 1, 1], [], []>} : vector<8x32xf32>, vector<32x24xf32>, vector<8x24xf32> -> vector<8x24xf32>
    %10 = vector.broadcast %6 : vector<1x24xf32> to vector<8x24xf32>
    %11 = arith.addf %9, %10 : vector<8x24xf32>
    %12 = vector.extract_strided_slice %11 {offsets = [0, 0], sizes = [8, 8], strides = [1, 1]} : vector<8x24xf32> to vector<8x8xf32>
    %13 = vector.extract_strided_slice %11 {offsets = [0, 8], sizes = [8, 8], strides = [1, 1]} : vector<8x24xf32> to vector<8x8xf32>
    %14 = vector.extract_strided_slice %11 {offsets = [0, 16], sizes = [8, 8], strides = [1, 1]} : vector<8x24xf32> to vector<8x8xf32>
    %cst_9 = arith.constant dense<0.000000e+00> : vector<8x8xf32>
    %15 = tpu.matmul %12, %13, %cst_9 {dimension_numbers = #tpu.dot_dimension_numbers<[1], [1], [0], [0], [0, 0, 1, 0], [], []>} : vector<8x8xf32>, vector<8x8xf32>, vector<8x8xf32> -> vector<8x8xf32>
    %cst_10 = arith.constant 0.353553385 : f32
    %16 = vector.broadcast %cst_10 : f32 to vector<8x8xf32>
    %17 = arith.mulf %15, %16 : vector<8x8xf32>
    %cst_11 = arith.constant dense<0xFF800000> : vector<8xf32>
    %18 = vector.multi_reduction <maximumf>, %17, %cst_11 [1] : vector<8x8xf32> to vector<8xf32>
    %19 = vector.shape_cast %18 : vector<8xf32> to vector<8x1xf32>
    %20 = vector.broadcast %19 : vector<8x1xf32> to vector<8x8xf32>
    %21 = arith.subf %17, %20 : vector<8x8xf32>
    %22 = math.exp %21 : vector<8x8xf32>
    %cst_12 = arith.constant dense<0.000000e+00> : vector<8xf32>
    %23 = vector.multi_reduction <add>, %22, %cst_12 [1] : vector<8x8xf32> to vector<8xf32>
    %24 = vector.shape_cast %23 : vector<8xf32> to vector<8x1xf32>
    %25 = tpu.reciprocal %24 : vector<8x1xf32> -> vector<8x1xf32>
    %26 = vector.broadcast %25 : vector<8x1xf32> to vector<8x8xf32>
    %27 = arith.mulf %22, %26 : vector<8x8xf32>
    %c0_13 = arith.constant 0 : index
    %c0_14 = arith.constant 0 : index
    %c0_15 = arith.constant 0 : index
    %c0_16 = arith.constant 0 : index
    %28 = vector.load %arg9[%c0_13, %c0_14, %c0_15, %c0_16] : memref<1x1x8x8xf32, #tpu.memory_space<vmem>>, vector<1x1x8x8xf32>
    %29 = vector.shape_cast %28 : vector<1x1x8x8xf32> to vector<8x8xf32>
    %30 = vector.shape_cast %27 : vector<8x8xf32> to vector<1x1x8x8xf32>
    tpu.vector_store %arg9[%c0_13, %c0_14, %c0_15, %c0_16], %30 {strides = array<i32>} : memref<1x1x8x8xf32, #tpu.memory_space<vmem>>, vector<1x1x8x8xf32>,
    %cst_17 = arith.constant dense<0.000000e+00> : vector<8x8xf32>
    %31 = tpu.matmul %27, %14, %cst_17 {dimension_numbers = #tpu.dot_dimension_numbers<[1], [0], [0], [1], [0, 0, 1, 1], [], []>} : vector<8x8xf32>, vector<8x8xf32>, vector<8x8xf32> -> vector<8x8xf32>
    %c0_18 = arith.constant 0 : index
    %c0_19 = arith.constant 0 : index
    %c0_20 = arith.constant 0 : index
    %32 = vector.load %arg6[%c0_18, %c0_19, %c0_20] : memref<1x8x32xf32, #tpu.memory_space<vmem>>, vector<1x8x32xf32>
    %33 = vector.shape_cast %32 : vector<1x8x32xf32> to vector<8x32xf32>
    %cst_21 = arith.constant dense<0.000000e+00> : vector<8x32xf32>
    %34 = tpu.matmul %31, %33, %cst_21 {dimension_numbers = #tpu.dot_dimension_numbers<[1], [0], [0], [1], [0, 0, 1, 1], [], []>} : vector<8x8xf32>, vector<8x32xf32>, vector<8x32xf32> -> vector<8x32xf32>
    %c0_22 = arith.constant 0 : index
    %c0_23 = arith.constant 0 : index
    %c0_24 = arith.constant 0 : index
    %35 = vector.load %arg8[%c0_22, %c0_23, %c0_24] : memref<1x8x32xf32, #tpu.memory_space<vmem>>, vector<1x8x32xf32>
    %36 = vector.shape_cast %34 : vector<8x32xf32> to vector<1x8x32xf32>
    %37 = arith.addf %35, %36 : vector<1x8x32xf32>
    %c0_25 = arith.constant 0 : index
    %c0_26 = arith.constant 0 : index
    %c0_27 = arith.constant 0 : index
    %38 = vector.load %arg8[%c0_25, %c0_26, %c0_27] : memref<1x8x32xf32, #tpu.memory_space<vmem>>, vector<1x8x32xf32>
    tpu.vector_store %arg8[%c0_25, %c0_26, %c0_27], %37 {strides = array<i32>} : memref<1x8x32xf32, #tpu.memory_space<vmem>>, vector<1x8x32xf32>,
    %c3_i32 = arith.constant 3 : i32
    %39 = arith.cmpi eq, %arg2, %c3_i32 : i32
    %40 = arith.extui %39 : i1 to i32
    %c0_i32_28 = arith.constant 0 : i32
    %41 = arith.cmpi ne, %40, %c0_i32_28 : i32
    scf.if %41 {
      %c0_29 = arith.constant 0 : index
      %c0_30 = arith.constant 0 : index
      %c0_31 = arith.constant 0 : index
      %42 = vector.load %arg8[%c0_29, %c0_30, %c0_31] : memref<1x8x32xf32, #tpu.memory_space<vmem>>, vector<1x8x32xf32>
      %c0_32 = arith.constant 0 : index
      %c0_33 = arith.constant 0 : index
      %43 = vector.load %arg7[%c0_32, %c0_33] : memref<1x32xf32, #tpu.memory_space<vmem>>, vector<1x32xf32>
      %44 = vector.shape_cast %43 : vector<1x32xf32> to vector<1x1x32xf32>
      %45 = vector.broadcast %44 : vector<1x1x32xf32> to vector<1x8x32xf32>
      %46 = arith.addf %42, %45 : vector<1x8x32xf32>
      %c0_34 = arith.constant 0 : index
      %c0_35 = arith.constant 0 : index
      %c0_36 = arith.constant 0 : index
      %47 = vector.load %arg8[%c0_34, %c0_35, %c0_36] : memref<1x8x32xf32, #tpu.memory_space<vmem>>, vector<1x8x32xf32>
      tpu.vector_store %arg8[%c0_34, %c0_35, %c0_36], %46 {strides = array<i32>} : memref<1x8x32xf32, #tpu.memory_space<vmem>>, vector<1x8x32xf32>,
    } else {
    }
    return
  }
  func.func @transform_0(%arg0: i32, %arg1: i32, %arg2: i32) -> (i32, i32, i32) {
    %c0_i32 = arith.constant 0 : i32
    %c0_i32_0 = arith.constant 0 : i32
    %c0_i32_1 = arith.constant 0 : i32
    return %arg0, %c0_i32, %c0_i32_0 : i32, i32, i32
  }
  func.func @transform_1(%arg0: i32, %arg1: i32, %arg2: i32) -> (i32, i32, i32) {
    %c0_i32 = arith.constant 0 : i32
    %c0_i32_0 = arith.constant 0 : i32
    %c0_i32_1 = arith.constant 0 : i32
    return %arg2, %c0_i32, %c0_i32_0 : i32, i32, i32
  }
  func.func @transform_2(%arg0: i32, %arg1: i32, %arg2: i32) -> (i32, i32, i32) {
    %c0_i32 = arith.constant 0 : i32
    %c0_i32_0 = arith.constant 0 : i32
    %c0_i32_1 = arith.constant 0 : i32
    return %arg2, %c0_i32, %c0_i32_0 : i32, i32, i32
  }
  func.func @transform_3(%arg0: i32, %arg1: i32, %arg2: i32) -> (i32, i32, i32) {
    %c0_i32 = arith.constant 0 : i32
    %c0_i32_0 = arith.constant 0 : i32
    %c0_i32_1 = arith.constant 0 : i32
    return %arg2, %c0_i32, %c0_i32_0 : i32, i32, i32
  }
  func.func @transform_4(%arg0: i32, %arg1: i32, %arg2: i32) -> (i32, i32) {
    %c0_i32 = arith.constant 0 : i32
    %c0_i32_0 = arith.constant 0 : i32
    %c0_i32_1 = arith.constant 0 : i32
    return %c0_i32, %c0_i32_0 : i32, i32
  }
  func.func @transform_5(%arg0: i32, %arg1: i32, %arg2: i32) -> (i32, i32, i32) {
    %c0_i32 = arith.constant 0 : i32
    %c0_i32_0 = arith.constant 0 : i32
    return %arg0, %arg1, %c0_i32 : i32, i32, i32
  }
  func.func @transform_6(%arg0: i32, %arg1: i32, %arg2: i32) -> (i32, i32, i32, i32) {
    %c0_i32 = arith.constant 0 : i32
    %c0_i32_0 = arith.constant 0 : i32
    return %arg0, %arg2, %arg1, %c0_i32 : i32, i32, i32, i32
  }
}

</mosaic_0001>

<bundles_post_ra>
// kernel: tpu_custom_call.1
= control target key start
LH: loop header
LB: loop body
LE: loop exit
PB: predicated region body
PF: predicated region fallthrough
CT: control target
= control target key end

     0   :  { %s1515_s0 = inlined_call_operand.vmem [shape: f32[2,8,32], index: 0, kind: input, shape index: {}]   ;;  %s1516_s1 = inlined_call_operand.vmem [shape: f32[4,32,24], index: 1, kind: input, shape index: {}]   ;;  %s1517_s2 = inlined_call_operand.vmem [shape: f32[4,1,24], index: 2, kind: input, shape index: {}]   ;;  %s1518_s3 = inlined_call_operand.vmem [shape: f32[4,8,32], index: 3, kind: input, shape index: {}]   ;;  %s1519_s4 = inlined_call_operand.vmem [shape: f32[1,32], index: 4, kind: input, shape index: {}]   ;;  %s1520_s5 = inlined_call_operand.hbm [shape: f32[2,8,32], index: 5, kind: output, shape index: {0}]   ;;  %s1521_s6 = inlined_call_operand.hbm [shape: f32[2,4,8,8], index: 6, kind: output, shape index: {1}]  }
   0x1   :  { %1539 = sst [smem:[#allocation22_spill]] %s1521_s6 }
   0x2   :  { %12 = vsyncpa [#allocation3], 0 }
   0x3   :  { %14 = vsyncpa [#allocation3 + $0x1], 0 }
   0x4   :  { %15 = vsyncpa [#allocation5], 0 }
   0x5   :  { %17 = vsyncpa [#allocation5 + $0x1], 0  ;;  %s1238_s21 = smov 0   ;;  %s1240_s22 = smov 0  }
   0x6   :  { %s1242_s23 = smov 0   ;;  %s1244_s24 = smov 0  }
   0x7   :  { %s1246_s25 = smov 0   ;;  %s1248_s26 = smov 0  }
   0x8   :  { %s1250_s27 = smov 0   ;;  %s1252_s28 = smov 0  }
   0x9   :  { %s1254_s29 = smov 0   ;;  %s1256_s30 = smov 0  }
   0xa   :  { %s1258_s7 = smov 0  }
   0xb LB: > { %1540 = sst [smem:[#allocation8_spill]] %s1153_s21  ;;  %s862_s8 = sadd.s32 4294967295, %s1193_s7   ;;  %s1193_s7 = sphi %s1258_s7, %s23_s7   ;;  %s1189_s30 = sphi %s1256_s30, %s1577_s30   ;;  %s1185_s29 = sphi %s1254_s29, %s1582_s29   ;;  %s1181_s28 = sphi %s1252_s28, %s1575_s28   ;;  %s1177_s27 = sphi %s1250_s27, %s1574_s27   ;;  %s1173_s26 = sphi %s1248_s26, %s1573_s26   ;;  %s1169_s25 = sphi %s1246_s25, %s1581_s25   ;;  %s1165_s24 = sphi %s1244_s24, %s1580_s24   ;;  %s1161_s23 = sphi %s1242_s23, %s1571_s23   ;;  %s1157_s22 = sphi %s1240_s22, %s1579_s22   ;;  %s1153_s21 = sphi %s1238_s21, %s1578_s21  }
   0xc   : > { %1541 = sst [smem:[#allocation9_spill]] %s1161_s23  ;;  %s863_s9 = sadd.s32 4294967294, %s1193_s7  }
   0xd   : > { %1542 = sst [smem:[#allocation10_spill]] %s1165_s24  ;;  %s35_s10 = sadd.s32 1, %s1185_s29 }
   0xe   : > { %1543 = sst [smem:[#allocation11_spill]] %s1173_s26  ;;  %s42_s11 = sadd.s32 1, %s1189_s30 }
   0xf   : > { %1544 = sst [smem:[#allocation12_spill]] %s1185_s29  ;;  %p36_p0 = scmp.ge.s32.totalorder %s35_s10, 4 }
  0x10   : > { %1545 = sst [smem:[#allocation13_spill]] %s1189_s30  ;;  %s176_s12 = sadd.s32 1, %s1173_s26 }
  0x11   : > { %1546 = sst [smem:[#allocation14_spill]] %s1193_s7  ;;  %p186_p1 = scmp.ne.s32.totalorder %s1173_s26, %s1169_s25 }
  0x12   : > { %p1300_p2 = scmp.eq.s32.totalorder %s862_s8, 7  ;;  %s1584_s10 = smov (%p36_p0, %s35_s10), 0 }
  0x13   : > { %1548 = sst [smem:[#allocation15_spill]] %s1584_s10  ;;  %s1586_s11 = smov (!%p36_p0, %s42_s11), %s1189_s30 }
  0x14   : > { %p1309_p3 = por %p1300_p2, %p186_p1  ;;  %p192_p4 = scmp.ne.s32.totalorder %s1169_s25, %s1165_s24 }
  0x15   : > { %p44_p5 = scmp.ge.s32.totalorder %s1586_s11, 2  ;;  %p1315_p6 = scmp.eq.s32.totalorder %s863_s9, 7 }
  0x16   : > { %s200_s16 = ssub.s32 %s1185_s29, %s1584_s10  ;;  %s206_s17 = sadd.s32 1, %s1161_s23 }
  0x17   : > { %s1588_s11 = smov (%p44_p5, %s1586_s11), 0  ;;  %p1326_p7 = por %p1315_p6, %p192_p4 }
  0x18   : > { %1551 = sst [smem:[#allocation16_spill]] %s1588_s11  ;;  %p216_p8 = scmp.ne.s32.totalorder %s1161_s23, %s1157_s22 }
  0x19   : > { %s1552_s18 = scalar_select %p1326_p7, 1, 0 }
  0x1a   : > { %s171_s19 = ssub.s32 %s1189_s30, %s1588_s11  ;;  %p222_p9 = scmp.ne.s32.totalorder %s1157_s22, %s1153_s21 }
  0x1b   : > { %1553 = sst [smem:[#allocation17_spill]] %s1552_s18  ;;  %p174_p10 = scmp.eq.s32.totalorder %s171_s19, 0 }
  0x1c   : > { %s201_s20 = sor.u32 %s200_s16, %s171_s19  ;;  %p1338_p12 = por %p216_p8, %p1300_p2 }
  0x1d   : > { %p204_p11 = scmp.eq.s32.totalorder %s201_s20, 0  ;;  %p1350_p13 = por %p222_p9, %p1315_p6 }
  0x1e   : > { %s1554_s8 = scalar_select %p1338_p12, 1, 0 }
  0x1f   : > { %s1343_s9 = scalar_select %p174_p10, %s1173_s26, %s176_s12  }
  0x20   : > { %1555 = sst [smem:[#allocation18_spill]] %s1554_s8  ;;  %p866_p0 = scmp.ge.s32.totalorder %s1193_s7, 1 }
  0x21   : > { %1556 = sst [smem:[#allocation19_spill]] %s1343_s9  ;;  %p272_p1 = scmp.lt.s32.totalorder %s1193_s7, 9 }
  0x22   : > { %s1346_s10 = scalar_select %p204_p11, %s1161_s23, %s206_s17  }
  0x23   : > { %s1558_s29 = scalar_select %p1350_p13, 1, 0 }
  0x24   : > { %1557 = sst [smem:[#allocation20_spill]] %s1346_s10  ;;  %p273_p4 = pnand %p866_p0, %p272_p1 }
  0x25   : > { %1559 = sst [smem:[#allocation21_spill]] %s1558_s29  ;;  %s1527_s12 = sand.u32 (!%p273_p4), 1, %s1169_s25  }
  0x26   : > { %276 = sbr.rel (%p273_p4) target bundleno = 1416 (0x588), region = 40  ;;  %s1528_s13 = sand.u32 (!%p273_p4), 1, %s1157_s22  }
  0x27   : > { %s867_s15 = sshll.u32 (!%p273_p4), %s1527_s12, 3  ;;  %s1362_s16 = sshll.u32 (!%p273_p4), %s1528_s13, 3 }
  0x28   : > { %p318_p2 = scmp.lt.s32.totalorder (!%p273_p4), %s1181_s28, 1  ;;  %p322_p5 = scmp.lt.s32.totalorder (!%p273_p4), %s1177_s27, 3 }
  0x29   : > { %s317_s8 = scalar_lea.vmem (!%p273_p4), [#allocation4], %s1362_s16  ;;  %p873_p6 = scmp.ne.s32.totalorder (!%p273_p4), %s1177_s27, 0 }
  0x2d   : > { %s319_s17 = scalar_select %p318_p2, %s1181_s28, 1 }
  0x2e   : > { %s1368_s19 = scalar_select %p322_p5, %s1177_s27, 3 }
  0x2f   : > { %s869_s20 = sshll.u32 %s319_s17, 3  ;;  %s1387_s17 = scalar_lea.vmem [#allocation2], %s867_s15  ;;  %vm338_vm0 = vcmask (!%p873_p6), 261120   ;;  %v1195_v0 = vmov (!%p873_p6), 0.0  }
  0x30   : > { %s321_s9 = scalar_lea.vmem %s1515_s0, %s869_s20  ;;  %s889_s26 = sshll.u32 %s1368_s19, 5  ;;  %339 = vst.msk [vmem:[%s1387_s17] sm:$0xff] (!%p873_p6), %vm338_vm0, %v1195_v0 }
  0x31   : > { %s326_s13 = scalar_lea.vmem %s1516_s1, %s889_s26  ;;  %s329_s21 = scalar_lea.vmem %s1517_s2, %s1368_s19 }
  0x32   : > { %s872_s18 = sshll.u32 %s1368_s19, 3  ;;  %337 = sbr.rel (%p873_p6) target bundleno = 57 (0x39), region = 44 }
  0x33   : > { %s1385_s6 = scalar_lea.vmem %s1518_s3, %s872_s18 }
  0x39 PF: > { %v340_v1 = vld [vmem:[%s326_s13] sm:$0xff]  ;;  %v341_v2 = vld [vmem:[%s326_s13 + $0x8] sm:$0xff]  ;;  %v342_v3 = vld [vmem:[%s326_s13 + $0x10] sm:$0xff]  ;;  %v1196_v4 = vmov 0.0|0.0   ;;  %vm1197_vm1 = vmmov 0   ;;  %v1198_v7 = vmov 0.0  }
  0x3a   : > { %927 = vmatprep.subr.bf16.mxu0 %v1196_v4  ;;  %v928_v5 = vpack.c.bf16 %v341_v2, %v340_v1  ;;  %v343_v6 = vld [vmem:[%s326_s13 + $0x18] sm:$0xff]  ;;  %909 = vmatprep.mubr.msk.f32.mxu0 %vm1197_vm1, %v1198_v7  ;;  %v345_v9 = vld [vmem:[%s321_s9] sm:$0xff]  ;;  %vm352_vm2 = vcmask 261120   ;;  %s1199_s26 = smov 120   ;;  %vm429_vm3 = vcmask 64512   ;;  %p880_p8 = scmp.ne.s32.totalorder %s1177_s27, 3 }
  0x3b   : > { %912 = vmatprep.subr.mxu1 %v1198_v7  ;;  %914 = vmatprep.mubr.msk.f32.mxu1 %vm1197_vm1, %v1198_v7  ;;  %v931_v8 = vpack.c.bf16 %v343_v6, %v342_v3  ;;  %v874_v10 = vld [vmem:[%s329_s21] ss:$0 sm:$0xff]  ;;  %s1200_s21 = smov 112  }
  0x3c   : > { %929 = vmatpush3.bf16.msra.mxu0 %v928_v5  ;;  %v593_v24 = vld [vmem:[%s1385_s6] sm:$0xff] }
  0x3d   : > { %930 = vmatprep.subr.bf16.mxu0 %v1196_v4  ;;  %v667_v31 = vld [vmem:[%s1387_s17] sm:$0xff] }
  0x3e   : > { %v881_v36 = vld [vmem:[%s1519_s4] ss:$0 sm:$0xff] (!%p880_p8) }
  0x40   : > { %932 = vmatpush3.bf16.msra.mxu0 %v931_v8 }
  0x41   : > { %922 = vmatprep.subr.mxu0 %v1198_v7 }
  0x43   : > { %910 = vmatmul.mubr.msk.f32.vlgmr.msra.gmra.mrb[0].mxu0 %vm352_vm2, %v345_v9 }
  0x44   : > { %924 = vmatprep.mubr.msk.f32.mxu0 %vm1197_vm1, %v1198_v7  ;;  %923 = vmatpush3.msra.mxu0 %v593_v24 }
 0x116   : > { %v422_v11 = vpop.f32.mrb[0].mxu0 }
 0x117   : > { %v423_v12 = vadd.f32 %v874_v10, %v422_v11  ;;  %v911_v13 = vpop.f32.mrb[1].mxu0 }
 0x119   : > { %427 = vrot.lane.b32.xlu0 %v423_v12, %s1199_s26 }
 0x18b   : > { %v428_v14 = vpop.permute.xlu0 %427 }
 0x18c   : > { %913 = vmatpush3.xpose.msk.msra.mxu1 %vm429_vm3, %v428_v14 }
 0x18d   : > { %917 = vmatprep.subr.mxu1 %v1198_v7 }
 0x18f   : > { %915 = vmatmul.mubr.msk.f32.vlgmr.msra.gmra.mrb[0].mxu1 %vm429_vm3, %v423_v12 }
 0x190   : > { %919 = vmatprep.mubr.msk.f32.mxu1 %vm1197_vm1, %v1198_v7 }
 0x262   : > { %v500_v15 = vpop.f32.mrb[0].mxu1 }
 0x263   : > { %v504_v16 = vmul.f32 0.35355338, %v500_v15  ;;  %v916_v17 = vpop.f32.mrb[1].mxu1 }
 0x265   : > { %v505_v18 = vsel %vm429_vm3, %v504_v16, -inf }
 0x266   : > { %506 = vmax.xlane.f32.xlu0 %v505_v18 }
 0x2f3   : > { %v507_v19 = vpop.xlane.xlu0 %506 }
 0x2f4   : > { %v508_v20 = vsub.f32 %v504_v16, %v507_v19 }
 0x2f6   : > { %v509_v21 = vmul.f32 1.442695, %v508_v20 }
 0x2f8   : > { %1039 = vpow2.f32 %v509_v21 }
 0x302   : > { %v1040_v22 = vpop.eup %1039 }
 0x303   : > { %v511_v23 = vsel %vm429_vm3, %v1040_v22, 0.0 }
 0x304   : > { %512 = vadd.xlane.f32.xlu1 %v511_v23 }
 0x315   : > { %517 = vrot.lane.b32.xlu1 %v423_v12, %s1200_s21 }
 0x391   : > { %v513_v25 = vpop.xlane.xlu1 %512 }
 0x392   : > { %1041 = vrcp.f32 %v513_v25 }
 0x395   : > { %v518_v26 = vpop.permute.xlu1 %517 }
 0x396   : > { %918 = vmatpush3.msra.mxu1 %v518_v26 }
 0x39c   : > { %v1042_v27 = vpop.eup %1041 }
 0x39d   : > { %v515_v28 = vmul.f32 %v1042_v27, %v1040_v22 }
 0x39f   : > { %516 = vst.msk [vmem:[%s317_s8] sm:$0xff] %vm429_vm3, %v515_v28  ;;  %920 = vmatmul.mubr.msk.f32.vlgmr.msra.gmra.mrb[2].mxu1 %vm429_vm3, %v515_v28 }
 0x472   : > { %v589_v29 = vpop.f32.mrb[2].mxu1 }
 0x473   : > { %v921_v30 = vpop.f32.mrb[3].mxu1  ;;  %925 = vmatmul.mubr.msk.f32.vlgmr.msra.gmra.mrb[2].mxu0 %vm429_vm3, %v589_v29 }
 0x543   : > { %673 = sbr.rel (%p880_p8) target bundleno = 1364 (0x554), region = 48 }
 0x546   : > { %v663_v32 = vpop.f32.mrb[2].mxu0 }
 0x547   : > { %v668_v33 = vadd.f32 %v667_v31, %v663_v32  ;;  %v926_v34 = vpop.f32.mrb[3].mxu0 }
 0x549   : > { %669 = vst.msk [vmem:[%s1387_s17] sm:$0xff] %vm352_vm2, %v668_v33 }
 0x550   : > { %v674_v35 = vld [vmem:[%s1387_s17] sm:$0xff] }
 0x551   : > { %v682_v37 = vadd.f32 %v881_v36, %v674_v35 }
 0x553   : > { %683 = vst.msk [vmem:[%s1387_s17] sm:$0xff] %vm352_vm2, %v682_v37 }
 0x554 PF: > { %s884_s30 = sshll.u32 %s1181_s28, 7  ;;  %s704_s18 = sshll.u32 %s1387_s17, 4  ;;  %s705_s18 = int_to_ptr.vmem [resolvable:$true] %s704_s18 }
 0x555   : > { %s1426_s11 = scalar_lea.hbm %s1520_s5, %s884_s30  ;;  %s1560_s9 = sand.u32 1, %s1169_s25  }
 0x556   : > { %s685_s12 = scalar_lea.sflag [#allocation3], %s1560_s9  ;;  %s1043_s13 = scalar_lea.vmem %s705_s18, 128 }
 0x557   : > { %p1044_p9 = scmp.ne.s32.totalorder %s705_s18, %s1043_s13  ;;  %s1201_s15 = smov [#allocation2]  }
 0x558   : > { %s1047_s19 = sshll.u32 %s1201_s15, 4  ;;  %s1048_s19 = int_to_ptr.vmem [resolvable:$false] %s1047_s19 }
 0x559   : > { %p1045_p10 = pnand %p1044_p9, %p1309_p3  ;;  %s1049_s20 = scalar_lea.vmem %s1048_s19, 256 }
 0x55a   : > { %p1050_p0 = scmp.lt.s32.totalorder %s705_s18, %s1048_s19  ;;  %p1051_p1 = scmp.lt.s32.totalorder %s1049_s20, %s1043_s13 }
 0x55b   : > { %p1046_p11 = pneg %p1045_p10 }
 0x55c   : > { %p1052_p4 = por %p1051_p1, %p1050_p0 }
 0x55e   : > { %p1053_p2 = pnand %p1052_p4, %p1046_p11 }
 0x560   : > { %1056 = shalt.err (!%p1053_p2)
}
 0x561   : > { %s1057_s17 = scalar_lea.hbm %s1426_s11, 128  ;;  %s1061_s26 = scalar_lea.hbm %s1520_s5, 256 }
 0x562   : > { %p1058_p5 = scmp.ne.s32.totalorder %s1426_s11, %s1057_s17  ;;  %p1062_p9 = scmp.lt.u32.totalorder %s1426_s11, %s1520_s5 }
 0x563   : > { %p1063_p10 = scmp.lt.u32.totalorder %s1061_s26, %s1057_s17  ;;  %p1065_p0 = scmp.lt.u32.totalorder %s1057_s17, %s1426_s11 }
 0x564   : > { %p1059_p6 = pnand %p1058_p5, %p1309_p3 }
 0x565   : > { %p1064_p11 = por %p1063_p10, %p1062_p9 }
 0x566   : > { %p1060_p8 = pneg %p1059_p6 }
 0x567   : > { %p1066_p1 = por %p1065_p0, %p1064_p11 }
 0x569   : > { %p1067_p4 = pnand %p1066_p1, %p1060_p8 }
 0x56b   : > { %1070 = shalt.err (!%p1067_p4)
}
 0x56c   : > { %933 = dma.vmem_to_hbm [thread:$0]  (%p1309_p3), %s705_s18, 128, %s1426_s11, %s685_s12  }
 0x56d   : > { %s885_s30 = sshll.u32 %s1181_s28, 2  ;;  %s720_s7 = sshll.u32 %s317_s8, 4  ;;  %s1452_s7 = int_to_ptr.vmem [resolvable:$true] %s720_s7 }
 0x56e   : > { %s716_s10 = sadd.s32 %s1177_s27, %s885_s30  ;;  %s1562_s14 = sld [smem:[#allocation22_spill]] }
 0x56f   : > { %s886_s9 = sshll.u32 %s716_s10, 7  ;;  %s1563_s20 = sand.u32 1, %s1157_s22  }
 0x570   : > { %s690_s17 = scalar_lea.sflag [#allocation5], %s1563_s20  ;;  %s1071_s23 = scalar_lea.vmem %s1452_s7, 128 }
 0x571   : > { %p1072_p2 = scmp.ne.s32.totalorder %s1452_s7, %s1071_s23  ;;  %s1202_s28 = smov [#allocation4]  }
 0x572   : > { %s1075_s8 = sshll.u32 %s1202_s28, 4  ;;  %s1076_s8 = int_to_ptr.vmem [resolvable:$false] %s1075_s8 }
 0x573   : > { %p1073_p3 = pnand %p1072_p2, %p1338_p12  ;;  %s1077_s27 = scalar_lea.vmem %s1076_s8, 256 }
 0x574   : > { %s718_s19 = scalar_lea.hbm %s1562_s14, %s886_s9  ;;  %p1078_p6 = scmp.lt.s32.totalorder %s1452_s7, %s1076_s8 }
 0x575   : > { %p1074_p5 = pneg %p1073_p3  ;;  %p1079_p8 = scmp.lt.s32.totalorder %s1077_s27, %s1071_s23 }
 0x577   : > { %p1080_p9 = por %p1079_p8, %p1078_p6 }
 0x579   : > { %p1081_p10 = pnand %p1080_p9, %p1074_p5 }
 0x57b   : > { %1084 = shalt.err (!%p1081_p10)
}
 0x57c   : > { %s1085_s16 = scalar_lea.hbm %s718_s19, 128  ;;  %s1089_s12 = scalar_lea.hbm %s1562_s14, 1024 }
 0x57d   : > { %p1086_p11 = scmp.ne.s32.totalorder %s718_s19, %s1085_s16  ;;  %p1090_p4 = scmp.lt.u32.totalorder %s718_s19, %s1562_s14 }
 0x57e   : > { %p1091_p2 = scmp.lt.u32.totalorder %s1089_s12, %s1085_s16  ;;  %p1093_p13 = scmp.lt.u32.totalorder %s1085_s16, %s718_s19 }
 0x57f   : > { %p1087_p0 = pnand %p1086_p11, %p1338_p12 }
 0x580   : > { %p1092_p3 = por %p1091_p2, %p1090_p4 }
 0x581   : > { %p1088_p1 = pneg %p1087_p0 }
 0x582   : > { %p1094_p6 = por %p1093_p13, %p1092_p3 }
 0x584   : > { %p1095_p5 = pnand %p1094_p6, %p1088_p1 }
 0x586   : > { %1098 = shalt.err (!%p1095_p5)
}
 0x587   : > { %934 = dma.vmem_to_hbm [thread:$0]  (%p1338_p12), %s1452_s7, 128, %s718_s19, %s690_s17  }
 0x588 PF: > { %s1564_s21 = sld [smem:[#allocation14_spill]]  ;;  %s1565_s6 = sld [smem:[#allocation10_spill]] }
 0x58e   : > { %p944_p8 = scmp.ge.s32.totalorder %s1564_s21, 2  ;;  %s732_s10 = sand.u32 1, %s1565_s6  }
 0x58f   : > { %s733_s9 = scalar_lea.sflag [#allocation3], %s732_s10 }
 0x590   : > { %p938_p9 = pnand %p944_p8, %p1326_p7 }
 0x592   : > { %1144 = dma.done.wait (!%p938_p9), %s733_s9, 128  }
 0x593   : > { %1146 = vsyncadd (!%p938_p9), %s733_s9, 4294967168  ;;  %s1567_s13 = sld [smem:[#allocation8_spill]]  ;;  %s1568_s15 = sld [smem:[#allocation21_spill]] }
 0x599   : > { %s741_s20 = sand.u32 1, %s1567_s13   ;;  %p1569_p13 = scmp.ne.s32.totalorder %s1568_s15, 0 }
 0x59a   : > { %s742_s23 = scalar_lea.sflag [#allocation5], %s741_s20 }
 0x59b   : > { %p941_p10 = pnand %p944_p8, %p1569_p13 }
 0x59d   : > { %1148 = dma.done.wait (!%p941_p10), %s742_s23, 128  }
 0x59e   : > { %1150 = vsyncadd (!%p941_p10), %s742_s23, 4294967168  ;;  %s23_s7 = sadd.s32 1, %s1564_s21   ;;  %s1570_s29 = sld [smem:[#allocation9_spill]] }
 0x59f   : > { %p20_p12 = scmp.ge.s32.totalorder %s23_s7, 10   ;;  %s1571_s23 = sld [smem:[#allocation20_spill]] }
 0x5a0   : > { %s1572_s19 = sld [smem:[#allocation11_spill]]  ;;  %s1573_s26 = sld [smem:[#allocation19_spill]] }
 0x5a1   : > { %s1574_s27 = sld [smem:[#allocation12_spill]]  ;;  %s1575_s28 = sld [smem:[#allocation13_spill]] }
 0x5a2   : > { %s1576_s17 = sld [smem:[#allocation15_spill]]  ;;  %s1577_s30 = sld [smem:[#allocation16_spill]] }
 0x5a3   : > { %s1578_s21 = smov %s1157_s22  ;;  %s1580_s24 = smov %s1169_s25 }
 0x5a4   : > { %s1579_s22 = smov %s1570_s29  ;;  %22 = sbr.rel (!%p20_p12) target bundleno = 11 (0xb), region = 109 }
 0x5a6   : > { %s1581_s25 = smov %s1572_s19 }
 0x5a8   : > { %s1582_s29 = smov %s1576_s17 }
 0x5ab   :  { %747 = vsyncpa [#allocation3], 1 }
 0x5ac   :  { %749 = vsyncpa [#allocation3 + $0x1], 1 }
 0x5ad   :  { %750 = vsyncpa [#allocation5], 1 }
 0x5ae   :  { %752 = vsyncpa [#allocation5 + $0x1], 1 }

</bundles_post_ra>
